<compile_context>
chip_gen: v7x
topology: tpu7x:2x2x1
jax: 0.10.0
libtpu: 0.0.40
codegen_flags: <defaults>
</compile_context>

<pallas_src>
from typing import NamedTuple, Sequence, Tuple

import jax
import jax.numpy as jnp
from jax.experimental import pallas as pl
from jax.experimental.pallas import tpu as pltpu

_LANE = 128
_SUBLANE = 8


def _round_up(x, m):
    return ((x + m - 1) // m) * m


def _apply_activation(name, x):
    name = name.lower()
    if name == "relu":
        return jnp.maximum(x, 0.0)
    if name == "sigmoid":
        return jax.nn.sigmoid(x)
    raise ValueError("Invalid activation layer")


# --------------------------------------------------------------------------- #
# One-time parameter preparation (hoisted out of the forward path).
# --------------------------------------------------------------------------- #
class PreparedAutoencoder(NamedTuple):
    arrays: Tuple[jnp.ndarray, ...]        # [w0, b0, w1, b1, ...] padded
    activations: Tuple[str, ...]
    true_dims: Tuple[Tuple[int, int], ...]  # per-layer (K, N) true shapes
    in_features: int
    out_features: int
    out_padded: int


def prepare_autoencoder_params(params, activations, *, weight_dtype=jnp.float32):
    """Pad/cast parameters once; reuse across forward calls.

    params: list of (W, b), W shaped (in_features, out_features), b (1, out).
    The first layer's K is kept at the true input width F (x is not lane-padded);
    every layer's N -- and therefore every later layer's K -- is padded to 128.
    Weights are cast to `weight_dtype` (f32 exact, bf16 fast); biases stay f32.
    """
    arrays = []
    true_dims = []
    prev_np = None
    for li, (w, b) in enumerate(params):
        K, N = w.shape
        Kp = K if li == 0 else prev_np          # matches previous padded width
        Np = _round_up(N, _LANE)
        wp = jnp.zeros((Kp, Np), weight_dtype).at[:K, :N].set(
            jnp.asarray(w, weight_dtype))
        bp = jnp.zeros((1, Np), jnp.float32).at[:, :N].set(
            jnp.asarray(b, jnp.float32))
        arrays += [wp, bp]
        true_dims.append((K, N))
        prev_np = Np

    in_features = params[0][0].shape[0]
    out_features = params[-1][0].shape[1]
    return PreparedAutoencoder(
        arrays=tuple(arrays),
        activations=tuple(activations),
        true_dims=tuple(true_dims),
        in_features=in_features,
        out_features=out_features,
        out_padded=_round_up(out_features, _LANE),
    )


# --------------------------------------------------------------------------- #
# Kernel
# --------------------------------------------------------------------------- #
def make_autoencoder_kernel(activations, n_layers):
    """Kernel args: (x_ref, w0, b0, w1, b1, ..., out_ref). 6 fused layers."""

    def kernel(*refs):
        x_ref = refs[0]
        out_ref = refs[-1]
        param_refs = refs[1:-1]

        h = x_ref[...].astype(jnp.float32)
        # Unrolled over the 2*len(hidden)+2 layers: matmul (MXU, f32 acc) +
        # bias + activation (VPU/EUP) fused; intermediates stay in VMEM.
        for i in range(n_layers):
            w = param_refs[2 * i][...]
            b = param_refs[2 * i + 1][...]
            h = jnp.dot(h.astype(w.dtype), w,
                        preferred_element_type=jnp.float32) + b
            h = _apply_activation(activations[i], h)
        out_ref[...] = h.astype(out_ref.dtype)

    return kernel


# --------------------------------------------------------------------------- #
# Forward wrapper
# --------------------------------------------------------------------------- #
def autoencoder_forward(x, prepared: PreparedAutoencoder, *, tile_rows=2048):
    """Autoencoder forward (encode -> decode) as a single batch-tiled Pallas call.

    x: (B, F) float32, prepared: output of prepare_autoencoder_params.
    """
    B, F = x.shape
    assert F == prepared.in_features, "input width mismatch"

    # Batch tile: as large as tile_rows allows, but capped so the grid has
    # >= 2 steps whenever B allows (v7x 2-TensorCore sharding).
    if B <= _SUBLANE:
        TB = _SUBLANE
    else:
        TB = min(tile_rows, _round_up(pl.cdiv(B, 2), _SUBLANE))
    Bp = _round_up(B, TB)

    # Only row-pad x (feature dim stays at true width F); skip entirely if
    # the batch already divides the tile.
    xp = x if Bp == B else jnp.pad(x, ((0, Bp - B), (0, 0)))

    grid = (Bp // TB,)
    n_layers = len(prepared.arrays) // 2
    kernel = make_autoencoder_kernel(prepared.activations, n_layers)

    # x / out: one batch tile per grid step (software-pipelined).
    x_spec = pl.BlockSpec((TB, F), lambda i: (i, 0))
    out_spec = pl.BlockSpec((TB, prepared.out_padded), lambda i: (i, 0))
    # Params: full-array blocks with constant index_map -> VMEM-resident.
    param_specs = [pl.BlockSpec(p.shape, lambda i: (0, 0))
                   for p in prepared.arrays]

    # Advisory cost estimate for the XLA scheduler (true, unpadded work).
    flops = 2 * B * sum(k * n for (k, n) in prepared.true_dims)
    transcendentals = sum(
        B * n for (k, n), a in zip(prepared.true_dims, prepared.activations)
        if a.lower() == "sigmoid")
    bytes_accessed = 4 * xp.size + 4 * Bp * prepared.out_padded + sum(
        p.size * p.dtype.itemsize for p in prepared.arrays)

    out = pl.pallas_call(
        kernel,
        out_shape=jax.ShapeDtypeStruct((Bp, prepared.out_padded), jnp.float32),
        grid=grid,
        in_specs=[x_spec] + param_specs,
        out_specs=out_spec,
        compiler_params=pltpu.CompilerParams(
            dimension_semantics=("parallel",),
        ),
        cost_estimate=pl.CostEstimate(
            flops=flops,
            transcendentals=transcendentals,
            bytes_accessed=bytes_accessed,
        ),
    )(xp, *prepared.arrays)

    return out[:B, :prepared.out_features]


# --------------------------------------------------------------------------- #
# Reference & test
# --------------------------------------------------------------------------- #
def _reference_forward(x, params, activations):
    h = x
    for (w, b), a in zip(params, activations):
        h = h @ w + b
        h = _apply_activation(a, h)
    return h


if __name__ == "__main__":
    # Configuration consistent with the module's ctor:
    #   Autoencoder(n_features=32, hidden_layers_size=[64, 32],
    #               latent_size=16, activation='relu', last_activation='sigmoid')
    n_features = 32
    hidden_layers_size = [64, 32]
    latent_size = 16
    activation = "relu"
    last_activation = "sigmoid"
    batch = 8

    # Layer dimensions exactly as built by _build_encoder / _build_decoder.
    enc_dims = [n_features] + hidden_layers_size + [latent_size]
    dec_dims = [latent_size] + hidden_layers_size[::-1] + [n_features]
    layer_dims = (list(zip(enc_dims[:-1], enc_dims[1:]))
                  + list(zip(dec_dims[:-1], dec_dims[1:])))
    activations = [activation] * (len(layer_dims) - 1) + [last_activation]

    # Deterministic parameter init (mimics nn.Linear's U(-1/sqrt(fan_in), +)).
    key = jax.random.PRNGKey(0)
    params = []
    for (fin, fout) in layer_dims:
        key, kw, kb = jax.random.split(key, 3)
        bound = 1.0 / (fin ** 0.5)
        w = jax.random.uniform(kw, (fin, fout), jnp.float32, -bound, bound)
        b = jax.random.uniform(kb, (1, fout), jnp.float32, -bound, bound)
        params.append((w, b))

    key, kx = jax.random.split(key)
    x = jax.random.normal(kx, (batch, n_features), dtype=jnp.float32)
    ref = _reference_forward(x, params, activations)

    # ---- Exact f32 path -----------------------------------------------------
    prepared_f32 = prepare_autoencoder_params(params, activations,
                                              weight_dtype=jnp.float32)
    out = jax.block_until_ready(autoencoder_forward(x, prepared_f32))
    assert out.shape == (batch, n_features)
    assert jnp.allclose(out, ref, atol=1e-5, rtol=1e-5), "f32 output mismatch"

    # ---- bf16 MXU fast path (looser tolerance) ------------------------------
    prepared_bf16 = prepare_autoencoder_params(params, activations,
                                               weight_dtype=jnp.bfloat16)
    out_bf16 = jax.block_until_ready(autoencoder_forward(x, prepared_bf16))
    assert jnp.allclose(out_bf16, ref, atol=5e-2, rtol=5e-2), "bf16 mismatch"

    # ---- Multi-tile grid path (exercises TB/Bp logic, grid >= 2) ------------
    key, kx2 = jax.random.split(key)
    x_big = jax.random.normal(kx2, (40, n_features), dtype=jnp.float32)
    out_big = jax.block_until_ready(autoencoder_forward(x_big, prepared_f32))
    ref_big = _reference_forward(x_big, params, activations)
    assert out_big.shape == (40, n_features)
    assert jnp.allclose(out_big, ref_big, atol=1e-5, rtol=1e-5), \
        "multi-tile output mismatch"

    print("KERNEL_OK")
</pallas_src>

<mosaic_0001>
module attributes {stable_mosaic.version = 11 : i64} {
  func.func @kernel(%arg0: i32, %arg1: memref<8x32xf32, #tpu.memory_space<vmem>>, %arg2: memref<32x128xf32, #tpu.memory_space<vmem>>, %arg3: memref<1x128xf32, #tpu.memory_space<vmem>>, %arg4: memref<128x128xf32, #tpu.memory_space<vmem>>, %arg5: memref<1x128xf32, #tpu.memory_space<vmem>>, %arg6: memref<128x128xf32, #tpu.memory_space<vmem>>, %arg7: memref<1x128xf32, #tpu.memory_space<vmem>>, %arg8: memref<128x128xf32, #tpu.memory_space<vmem>>, %arg9: memref<1x128xf32, #tpu.memory_space<vmem>>, %arg10: memref<128x128xf32, #tpu.memory_space<vmem>>, %arg11: memref<1x128xf32, #tpu.memory_space<vmem>>, %arg12: memref<128x128xf32, #tpu.memory_space<vmem>>, %arg13: memref<1x128xf32, #tpu.memory_space<vmem>>, %arg14: memref<8x128xf32, #tpu.memory_space<vmem>>) attributes {dimension_semantics = [#tpu.dimension_semantics<parallel>], iteration_bounds = array<i64: 1>, scalar_prefetch = 0 : i64, scratch_operands = 0 : i64, tpu.core_type = #tpu.core_type<tc>, window_params = [{transform_indices = @transform_0, window_bounds = array<i64: 8, 32>}, {pipeline_mode = #tpu.pipeline_mode<synchronous>, transform_indices = @transform_1, window_bounds = array<i64: 32, 128>}, {pipeline_mode = #tpu.pipeline_mode<synchronous>, transform_indices = @transform_2, window_bounds = array<i64: 1, 128>}, {pipeline_mode = #tpu.pipeline_mode<synchronous>, transform_indices = @transform_3, window_bounds = array<i64: 128, 128>}, {pipeline_mode = #tpu.pipeline_mode<synchronous>, transform_indices = @transform_4, window_bounds = array<i64: 1, 128>}, {pipeline_mode = #tpu.pipeline_mode<synchronous>, transform_indices = @transform_5, window_bounds = array<i64: 128, 128>}, {pipeline_mode = #tpu.pipeline_mode<synchronous>, transform_indices = @transform_6, window_bounds = array<i64: 1, 128>}, {pipeline_mode = #tpu.pipeline_mode<synchronous>, transform_indices = @transform_7, window_bounds = array<i64: 128, 128>}, {pipeline_mode = #tpu.pipeline_mode<synchronous>, transform_indices = @transform_8, window_bounds = array<i64: 1, 128>}, {pipeline_mode = #tpu.pipeline_mode<synchronous>, transform_indices = @transform_9, window_bounds = array<i64: 128, 128>}, {pipeline_mode = #tpu.pipeline_mode<synchronous>, transform_indices = @transform_10, window_bounds = array<i64: 1, 128>}, {pipeline_mode = #tpu.pipeline_mode<synchronous>, transform_indices = @transform_11, window_bounds = array<i64: 128, 128>}, {pipeline_mode = #tpu.pipeline_mode<synchronous>, transform_indices = @transform_12, window_bounds = array<i64: 1, 128>}, {transform_indices = @transform_13, window_bounds = array<i64: 8, 128>}]} {
    %c0 = arith.constant 0 : index
    %c0_0 = arith.constant 0 : index
    %0 = vector.load %arg1[%c0, %c0_0] : memref<8x32xf32, #tpu.memory_space<vmem>>, vector<8x32xf32>
    %c0_1 = arith.constant 0 : index
    %c0_2 = arith.constant 0 : index
    %1 = vector.load %arg2[%c0_1, %c0_2] : memref<32x128xf32, #tpu.memory_space<vmem>>, vector<32x128xf32>
    %c0_3 = arith.constant 0 : index
    %c0_4 = arith.constant 0 : index
    %2 = vector.load %arg3[%c0_3, %c0_4] : memref<1x128xf32, #tpu.memory_space<vmem>>, vector<1x128xf32>
    %cst = arith.constant dense<0.000000e+00> : vector<8x128xf32>
    %3 = tpu.matmul %0, %1, %cst {dimension_numbers = #tpu.dot_dimension_numbers<[1], [0], [0], [1], [0, 0, 1, 1], [], []>} : vector<8x32xf32>, vector<32x128xf32>, vector<8x128xf32> -> vector<8x128xf32>
    %4 = vector.broadcast %2 : vector<1x128xf32> to vector<8x128xf32>
    %5 = arith.addf %3, %4 : vector<8x128xf32>
    %cst_5 = arith.constant 0.000000e+00 : f32
    %6 = vector.broadcast %cst_5 : f32 to vector<8x128xf32>
    %7 = arith.maximumf %5, %6 : vector<8x128xf32>
    %c0_6 = arith.constant 0 : index
    %c0_7 = arith.constant 0 : index
    %8 = vector.load %arg4[%c0_6, %c0_7] : memref<128x128xf32, #tpu.memory_space<vmem>>, vector<128x128xf32>
    %c0_8 = arith.constant 0 : index
    %c0_9 = arith.constant 0 : index
    %9 = vector.load %arg5[%c0_8, %c0_9] : memref<1x128xf32, #tpu.memory_space<vmem>>, vector<1x128xf32>
    %cst_10 = arith.constant dense<0.000000e+00> : vector<8x128xf32>
    %10 = tpu.matmul %7, %8, %cst_10 {dimension_numbers = #tpu.dot_dimension_numbers<[1], [0], [0], [1], [0, 0, 1, 1], [], []>} : vector<8x128xf32>, vector<128x128xf32>, vector<8x128xf32> -> vector<8x128xf32>
    %11 = vector.broadcast %9 : vector<1x128xf32> to vector<8x128xf32>
    %12 = arith.addf %10, %11 : vector<8x128xf32>
    %cst_11 = arith.constant 0.000000e+00 : f32
    %13 = vector.broadcast %cst_11 : f32 to vector<8x128xf32>
    %14 = arith.maximumf %12, %13 : vector<8x128xf32>
    %c0_12 = arith.constant 0 : index
    %c0_13 = arith.constant 0 : index
    %15 = vector.load %arg6[%c0_12, %c0_13] : memref<128x128xf32, #tpu.memory_space<vmem>>, vector<128x128xf32>
    %c0_14 = arith.constant 0 : index
    %c0_15 = arith.constant 0 : index
    %16 = vector.load %arg7[%c0_14, %c0_15] : memref<1x128xf32, #tpu.memory_space<vmem>>, vector<1x128xf32>
    %cst_16 = arith.constant dense<0.000000e+00> : vector<8x128xf32>
    %17 = tpu.matmul %14, %15, %cst_16 {dimension_numbers = #tpu.dot_dimension_numbers<[1], [0], [0], [1], [0, 0, 1, 1], [], []>} : vector<8x128xf32>, vector<128x128xf32>, vector<8x128xf32> -> vector<8x128xf32>
    %18 = vector.broadcast %16 : vector<1x128xf32> to vector<8x128xf32>
    %19 = arith.addf %17, %18 : vector<8x128xf32>
    %cst_17 = arith.constant 0.000000e+00 : f32
    %20 = vector.broadcast %cst_17 : f32 to vector<8x128xf32>
    %21 = arith.maximumf %19, %20 : vector<8x128xf32>
    %c0_18 = arith.constant 0 : index
    %c0_19 = arith.constant 0 : index
    %22 = vector.load %arg8[%c0_18, %c0_19] : memref<128x128xf32, #tpu.memory_space<vmem>>, vector<128x128xf32>
    %c0_20 = arith.constant 0 : index
    %c0_21 = arith.constant 0 : index
    %23 = vector.load %arg9[%c0_20, %c0_21] : memref<1x128xf32, #tpu.memory_space<vmem>>, vector<1x128xf32>
    %cst_22 = arith.constant dense<0.000000e+00> : vector<8x128xf32>
    %24 = tpu.matmul %21, %22, %cst_22 {dimension_numbers = #tpu.dot_dimension_numbers<[1], [0], [0], [1], [0, 0, 1, 1], [], []>} : vector<8x128xf32>, vector<128x128xf32>, vector<8x128xf32> -> vector<8x128xf32>
    %25 = vector.broadcast %23 : vector<1x128xf32> to vector<8x128xf32>
    %26 = arith.addf %24, %25 : vector<8x128xf32>
    %cst_23 = arith.constant 0.000000e+00 : f32
    %27 = vector.broadcast %cst_23 : f32 to vector<8x128xf32>
    %28 = arith.maximumf %26, %27 : vector<8x128xf32>
    %c0_24 = arith.constant 0 : index
    %c0_25 = arith.constant 0 : index
    %29 = vector.load %arg10[%c0_24, %c0_25] : memref<128x128xf32, #tpu.memory_space<vmem>>, vector<128x128xf32>
    %c0_26 = arith.constant 0 : index
    %c0_27 = arith.constant 0 : index
    %30 = vector.load %arg11[%c0_26, %c0_27] : memref<1x128xf32, #tpu.memory_space<vmem>>, vector<1x128xf32>
    %cst_28 = arith.constant dense<0.000000e+00> : vector<8x128xf32>
    %31 = tpu.matmul %28, %29, %cst_28 {dimension_numbers = #tpu.dot_dimension_numbers<[1], [0], [0], [1], [0, 0, 1, 1], [], []>} : vector<8x128xf32>, vector<128x128xf32>, vector<8x128xf32> -> vector<8x128xf32>
    %32 = vector.broadcast %30 : vector<1x128xf32> to vector<8x128xf32>
    %33 = arith.addf %31, %32 : vector<8x128xf32>
    %cst_29 = arith.constant 0.000000e+00 : f32
    %34 = vector.broadcast %cst_29 : f32 to vector<8x128xf32>
    %35 = arith.maximumf %33, %34 : vector<8x128xf32>
    %c0_30 = arith.constant 0 : index
    %c0_31 = arith.constant 0 : index
    %36 = vector.load %arg12[%c0_30, %c0_31] : memref<128x128xf32, #tpu.memory_space<vmem>>, vector<128x128xf32>
    %c0_32 = arith.constant 0 : index
    %c0_33 = arith.constant 0 : index
    %37 = vector.load %arg13[%c0_32, %c0_33] : memref<1x128xf32, #tpu.memory_space<vmem>>, vector<1x128xf32>
    %cst_34 = arith.constant dense<0.000000e+00> : vector<8x128xf32>
    %38 = tpu.matmul %35, %36, %cst_34 {dimension_numbers = #tpu.dot_dimension_numbers<[1], [0], [0], [1], [0, 0, 1, 1], [], []>} : vector<8x128xf32>, vector<128x128xf32>, vector<8x128xf32> -> vector<8x128xf32>
    %39 = vector.broadcast %37 : vector<1x128xf32> to vector<8x128xf32>
    %40 = arith.addf %38, %39 : vector<8x128xf32>
    %41 = arith.negf %40 : vector<8x128xf32>
    %42 = math.exp %41 : vector<8x128xf32>
    %cst_35 = arith.constant 1.000000e+00 : f32
    %43 = vector.broadcast %cst_35 : f32 to vector<8x128xf32>
    %44 = arith.addf %43, %42 : vector<8x128xf32>
    %45 = arith.divf %43, %44 : vector<8x128xf32>
    %c0_36 = arith.constant 0 : index
    %c0_37 = arith.constant 0 : index
    %46 = vector.load %arg14[%c0_36, %c0_37] : memref<8x128xf32, #tpu.memory_space<vmem>>, vector<8x128xf32>
    tpu.vector_store %arg14[%c0_36, %c0_37], %45 {strides = array<i32>} : memref<8x128xf32, #tpu.memory_space<vmem>>, vector<8x128xf32>,
    return
  }
  func.func @transform_0(%arg0: i32) -> (i32, i32) {
    %c0_i32 = arith.constant 0 : i32
    %c0_i32_0 = arith.constant 0 : i32
    return %arg0, %c0_i32 : i32, i32
  }
  func.func @transform_1(%arg0: i32) -> (i32, i32) {
    %c0_i32 = arith.constant 0 : i32
    %c0_i32_0 = arith.constant 0 : i32
    %c0_i32_1 = arith.constant 0 : i32
    return %c0_i32, %c0_i32_0 : i32, i32
  }
  func.func @transform_2(%arg0: i32) -> (i32, i32) {
    %c0_i32 = arith.constant 0 : i32
    %c0_i32_0 = arith.constant 0 : i32
    %c0_i32_1 = arith.constant 0 : i32
    return %c0_i32, %c0_i32_0 : i32, i32
  }
  func.func @transform_3(%arg0: i32) -> (i32, i32) {
    %c0_i32 = arith.constant 0 : i32
    %c0_i32_0 = arith.constant 0 : i32
    %c0_i32_1 = arith.constant 0 : i32
    return %c0_i32, %c0_i32_0 : i32, i32
  }
  func.func @transform_4(%arg0: i32) -> (i32, i32) {
    %c0_i32 = arith.constant 0 : i32
    %c0_i32_0 = arith.constant 0 : i32
    %c0_i32_1 = arith.constant 0 : i32
    return %c0_i32, %c0_i32_0 : i32, i32
  }
  func.func @transform_5(%arg0: i32) -> (i32, i32) {
    %c0_i32 = arith.constant 0 : i32
    %c0_i32_0 = arith.constant 0 : i32
    %c0_i32_1 = arith.constant 0 : i32
    return %c0_i32, %c0_i32_0 : i32, i32
  }
  func.func @transform_6(%arg0: i32) -> (i32, i32) {
    %c0_i32 = arith.constant 0 : i32
    %c0_i32_0 = arith.constant 0 : i32
    %c0_i32_1 = arith.constant 0 : i32
    return %c0_i32, %c0_i32_0 : i32, i32
  }
  func.func @transform_7(%arg0: i32) -> (i32, i32) {
    %c0_i32 = arith.constant 0 : i32
    %c0_i32_0 = arith.constant 0 : i32
    %c0_i32_1 = arith.constant 0 : i32
    return %c0_i32, %c0_i32_0 : i32, i32
  }
  func.func @transform_8(%arg0: i32) -> (i32, i32) {
    %c0_i32 = arith.constant 0 : i32
    %c0_i32_0 = arith.constant 0 : i32
    %c0_i32_1 = arith.constant 0 : i32
    return %c0_i32, %c0_i32_0 : i32, i32
  }
  func.func @transform_9(%arg0: i32) -> (i32, i32) {
    %c0_i32 = arith.constant 0 : i32
    %c0_i32_0 = arith.constant 0 : i32
    %c0_i32_1 = arith.constant 0 : i32
    return %c0_i32, %c0_i32_0 : i32, i32
  }
  func.func @transform_10(%arg0: i32) -> (i32, i32) {
    %c0_i32 = arith.constant 0 : i32
    %c0_i32_0 = arith.constant 0 : i32
    %c0_i32_1 = arith.constant 0 : i32
    return %c0_i32, %c0_i32_0 : i32, i32
  }
  func.func @transform_11(%arg0: i32) -> (i32, i32) {
    %c0_i32 = arith.constant 0 : i32
    %c0_i32_0 = arith.constant 0 : i32
    %c0_i32_1 = arith.constant 0 : i32
    return %c0_i32, %c0_i32_0 : i32, i32
  }
  func.func @transform_12(%arg0: i32) -> (i32, i32) {
    %c0_i32 = arith.constant 0 : i32
    %c0_i32_0 = arith.constant 0 : i32
    %c0_i32_1 = arith.constant 0 : i32
    return %c0_i32, %c0_i32_0 : i32, i32
  }
  func.func @transform_13(%arg0: i32) -> (i32, i32) {
    %c0_i32 = arith.constant 0 : i32
    %c0_i32_0 = arith.constant 0 : i32
    return %arg0, %c0_i32 : i32, i32
  }
}

</mosaic_0001>

<bundles_post_ra>
// kernel: tpu_custom_call.1
= control target key start
LH: loop header
LB: loop body
LE: loop exit
PB: predicated region body
PF: predicated region fallthrough
CT: control target
= control target key end

     0   :  { %18 = vsyncpa [#allocation3], 0  ;;  %s1601_s0 = inlined_call_operand.hbm [shape: f32[8,32], index: 0, kind: input, shape index: {}]   ;;  %s1602_s1 = inlined_call_operand.hbm [shape: f32[32,128], index: 1, kind: input, shape index: {}]   ;;  %s1603_s2 = inlined_call_operand.vmem [shape: f32[1,128], index: 2, kind: input, shape index: {}]   ;;  %s1604_s3 = inlined_call_operand.hbm [shape: f32[128,128], index: 3, kind: input, shape index: {}]   ;;  %s1605_s4 = inlined_call_operand.vmem [shape: f32[1,128], index: 4, kind: input, shape index: {}]   ;;  %s1606_s5 = inlined_call_operand.hbm [shape: f32[128,128], index: 5, kind: input, shape index: {}]   ;;  %s1607_s6 = inlined_call_operand.vmem [shape: f32[1,128], index: 6, kind: input, shape index: {}]   ;;  %s1608_s7 = inlined_call_operand.hbm [shape: f32[128,128], index: 7, kind: input, shape index: {}]   ;;  %s1609_s8 = inlined_call_operand.vmem [shape: f32[1,128], index: 8, kind: input, shape index: {}]   ;;  %s1610_s9 = inlined_call_operand.hbm [shape: f32[128,128], index: 9, kind: input, shape index: {}]   ;;  %s1611_s10 = inlined_call_operand.vmem [shape: f32[1,128], index: 10, kind: input, shape index: {}]   ;;  %s1612_s11 = inlined_call_operand.hbm [shape: f32[128,128], index: 11, kind: input, shape index: {}]   ;;  %s1613_s12 = inlined_call_operand.vmem [shape: f32[1,128], index: 12, kind: input, shape index: {}]   ;;  %s1614_s13 = inlined_call_operand.hbm [shape: f32[8,128], index: 13, kind: output, shape index: {}]  }
   0x1   :  { %19 = vsyncpa [#allocation6], 0 }
   0x2   :  { %20 = vsyncpa [#allocation9], 0 }
   0x3   :  { %21 = vsyncpa [#allocation12], 0 }
   0x4   :  { %22 = vsyncpa [#allocation4], 0  ;;  %s1332_s25 = smov [#allocation5]   ;;  %s1146_s29 = scalar_lea.hbm %s1602_s1, 512 }
   0x5   :  { %s38_s26 = sshll.u32 %s1332_s25, 4  ;;  %p1147_p0 = scmp.ne.s32.totalorder %s1602_s1, %s1146_s29  ;;  %s39_s26 = int_to_ptr.vmem [resolvable:$true] %s38_s26 }
   0x6   :  { %p1150_p1 = scmp.lt.u32.totalorder %s1146_s29, %s1602_s1 }
   0x8   :  { %p1152_p2 = pnand %p1150_p1, %p1147_p0 }
   0xa   :  { %1155 = shalt.err (!%p1152_p2)
}
   0xb   :  { %s1156_s17 = scalar_lea.vmem %s39_s26, 512  ;;  %p1161_p4 = scmp.lt.s32.totalorder %s39_s26, %s39_s26 }
   0xc   :  { %p1157_p3 = scmp.ne.s32.totalorder %s39_s26, %s1156_s17  ;;  %p1162_p5 = scmp.lt.s32.totalorder %s1156_s17, %s1156_s17 }
   0xe   :  { %p1163_p6 = por %p1162_p5, %p1161_p4 }
  0x10   :  { %p1164_p7 = pnand %p1163_p6, %p1157_p3 }
  0x12   :  { %1167 = shalt.err (!%p1164_p7)
}
  0x13   :  { %s1333_s18 = smov 128   ;;  %s1334_s19 = smov 8  }
  0x14   :  { %44 = dma.hbm_to_vmem [thread:$0]  %s1602_s1, 512, %s39_s26, [#allocation6], %s1333_s18, %s1333_s18, %s1334_s19  }
  0x15   :  { %s1335_s22 = smov [#allocation8]   ;;  %s1336_s24 = smov [#allocation11]  }
  0x16   :  { %s66_s23 = sshll.u32 %s1335_s22, 4  ;;  %s94_s25 = sshll.u32 %s1336_s24, 4  ;;  %s67_s23 = int_to_ptr.vmem [resolvable:$true] %s66_s23  ;;  %s95_s25 = int_to_ptr.vmem [resolvable:$true] %s94_s25 }
  0x17   :  { %s1168_s29 = scalar_lea.hbm %s1606_s5, 2048 }
  0x18   :  { %p1169_p8 = scmp.ne.s32.totalorder %s1606_s5, %s1168_s29  ;;  %p1172_p9 = scmp.lt.u32.totalorder %s1168_s29, %s1606_s5 }
  0x1a   :  { %p1174_p10 = pnand %p1172_p9, %p1169_p8 }
  0x1c   :  { %1177 = shalt.err (!%p1174_p10)
}
  0x1d   :  { %s1178_s1 = scalar_lea.vmem %s67_s23, 2048  ;;  %p1183_p12 = scmp.lt.s32.totalorder %s67_s23, %s67_s23 }
  0x1e   :  { %p1179_p11 = scmp.ne.s32.totalorder %s67_s23, %s1178_s1  ;;  %p1184_p13 = scmp.lt.s32.totalorder %s1178_s1, %s1178_s1 }
  0x20   :  { %p1185_p0 = por %p1184_p13, %p1183_p12 }
  0x22   :  { %p1186_p1 = pnand %p1185_p0, %p1179_p11 }
  0x24   :  { %1189 = shalt.err (!%p1186_p1)
}
  0x25   :  { %72 = dma.hbm_to_vmem [thread:$0]  %s1606_s5, 2048, %s67_s23, [#allocation9], %s1333_s18, %s1333_s18, %s1334_s19  }
  0x26   :  { %s1190_s22 = scalar_lea.hbm %s1610_s9, 2048 }
  0x27   :  { %p1191_p2 = scmp.ne.s32.totalorder %s1610_s9, %s1190_s22  ;;  %p1194_p3 = scmp.lt.u32.totalorder %s1190_s22, %s1610_s9 }
  0x29   :  { %p1196_p4 = pnand %p1194_p3, %p1191_p2 }
  0x2b   :  { %1199 = shalt.err (!%p1196_p4)
}
  0x2c   :  { %s1200_s30 = scalar_lea.vmem %s95_s25, 2048  ;;  %p1205_p6 = scmp.lt.s32.totalorder %s95_s25, %s95_s25 }
  0x2d   :  { %p1201_p5 = scmp.ne.s32.totalorder %s95_s25, %s1200_s30  ;;  %p1206_p7 = scmp.lt.s32.totalorder %s1200_s30, %s1200_s30 }
  0x2f   :  { %p1207_p8 = por %p1206_p7, %p1205_p6 }
  0x31   :  { %p1208_p9 = pnand %p1207_p8, %p1201_p5 }
  0x33   :  { %1211 = shalt.err (!%p1208_p9)
}
  0x34   :  { %100 = dma.hbm_to_vmem [thread:$0]  %s1610_s9, 2048, %s95_s25, [#allocation12], %s1333_s18, %s1333_s18, %s1334_s19  }
  0x35   :  { %s1337_s14 = smov [#allocation2]   ;;  %s1338_s16 = smov [#allocation7]  }
  0x36   :  { %s29_s15 = sshll.u32 %s1337_s14, 4  ;;  %s52_s1 = sshll.u32 %s1338_s16, 4  ;;  %s30_s15 = int_to_ptr.vmem [resolvable:$true] %s29_s15  ;;  %s53_s1 = int_to_ptr.vmem [resolvable:$true] %s52_s1 }
  0x37   :  { %s1212_s20 = scalar_lea.hbm %s1601_s0, 128 }
  0x38   :  { %p1213_p10 = scmp.ne.s32.totalorder %s1601_s0, %s1212_s20  ;;  %p1216_p11 = scmp.lt.u32.totalorder %s1212_s20, %s1601_s0 }
  0x3a   :  { %p1218_p12 = pnand %p1216_p11, %p1213_p10 }
  0x3c   :  { %1221 = shalt.err (!%p1218_p12)
}
  0x3d   :  { %s1222_s9 = scalar_lea.vmem %s30_s15, 128  ;;  %p1227_p0 = scmp.lt.s32.totalorder %s30_s15, %s30_s15 }
  0x3e   :  { %p1223_p13 = scmp.ne.s32.totalorder %s30_s15, %s1222_s9  ;;  %p1228_p1 = scmp.lt.s32.totalorder %s1222_s9, %s1222_s9 }
  0x40   :  { %p1229_p2 = por %p1228_p1, %p1227_p0 }
  0x42   :  { %p1230_p3 = pnand %p1229_p2, %p1223_p13 }
  0x44   :  { %1233 = shalt.err (!%p1230_p3)
}
  0x45   :  { %32 = dma.hbm_to_vmem [thread:$0]  %s1601_s0, 128, %s30_s15, [#allocation3]  }
  0x46   :  { %s1234_s5 = scalar_lea.hbm %s1604_s3, 2048 }
  0x47   :  { %p1235_p4 = scmp.ne.s32.totalorder %s1604_s3, %s1234_s5  ;;  %p1238_p5 = scmp.lt.u32.totalorder %s1234_s5, %s1604_s3 }
  0x49   :  { %p1240_p6 = pnand %p1238_p5, %p1235_p4 }
  0x4b   :  { %1243 = shalt.err (!%p1240_p6)
}
  0x4c   :  { %s1244_s17 = scalar_lea.vmem %s53_s1, 2048  ;;  %p1249_p8 = scmp.lt.s32.totalorder %s53_s1, %s53_s1 }
  0x4d   :  { %p1245_p7 = scmp.ne.s32.totalorder %s53_s1, %s1244_s17  ;;  %p1250_p9 = scmp.lt.s32.totalorder %s1244_s17, %s1244_s17 }
  0x4f   :  { %p1251_p10 = por %p1250_p9, %p1249_p8 }
  0x51   :  { %p1252_p11 = pnand %p1251_p10, %p1245_p7 }
  0x53   :  { %1255 = shalt.err (!%p1252_p11)
}
  0x54   :  { %58 = dma.hbm_to_vmem [thread:$0]  %s1604_s3, 2048, %s53_s1, [#allocation6], %s1333_s18, %s1333_s18, %s1334_s19  }
  0x55   :  { %s1339_s20 = smov [#allocation10]   ;;  %s1340_s22 = smov [#allocation13]  }
  0x56   :  { %s80_s21 = sshll.u32 %s1339_s20, 4  ;;  %s108_s24 = sshll.u32 %s1340_s22, 4  ;;  %s81_s21 = int_to_ptr.vmem [resolvable:$true] %s80_s21  ;;  %s109_s24 = int_to_ptr.vmem [resolvable:$true] %s108_s24 }
  0x57   :  { %s1256_s25 = scalar_lea.hbm %s1608_s7, 2048 }
  0x58   :  { %p1257_p12 = scmp.ne.s32.totalorder %s1608_s7, %s1256_s25  ;;  %p1260_p13 = scmp.lt.u32.totalorder %s1256_s25, %s1608_s7 }
  0x5a   :  { %p1262_p0 = pnand %p1260_p13, %p1257_p12 }
  0x5c   :  { %1265 = shalt.err (!%p1262_p0)
}
  0x5d   :  { %s1266_s3 = scalar_lea.vmem %s81_s21, 2048  ;;  %p1271_p2 = scmp.lt.s32.totalorder %s81_s21, %s81_s21 }
  0x5e   :  { %p1267_p1 = scmp.ne.s32.totalorder %s81_s21, %s1266_s3  ;;  %p1272_p3 = scmp.lt.s32.totalorder %s1266_s3, %s1266_s3 }
  0x60   :  { %p1273_p4 = por %p1272_p3, %p1271_p2 }
  0x62   :  { %p1274_p5 = pnand %p1273_p4, %p1267_p1 }
  0x64   :  { %1277 = shalt.err (!%p1274_p5)
}
  0x65   :  { %86 = dma.hbm_to_vmem [thread:$0]  %s1608_s7, 2048, %s81_s21, [#allocation9], %s1333_s18, %s1333_s18, %s1334_s19  }
  0x66   :  { %s1278_s26 = scalar_lea.hbm %s1612_s11, 2048 }
  0x67   :  { %p1279_p6 = scmp.ne.s32.totalorder %s1612_s11, %s1278_s26  ;;  %p1282_p7 = scmp.lt.u32.totalorder %s1278_s26, %s1612_s11 }
  0x69   :  { %p1284_p8 = pnand %p1282_p7, %p1279_p6 }
  0x6b   :  { %1287 = shalt.err (!%p1284_p8)
}
  0x6c   :  { %s1288_s22 = scalar_lea.vmem %s109_s24, 2048  ;;  %p1293_p10 = scmp.lt.s32.totalorder %s109_s24, %s109_s24 }
  0x6d   :  { %p1289_p9 = scmp.ne.s32.totalorder %s109_s24, %s1288_s22  ;;  %p1294_p11 = scmp.lt.s32.totalorder %s1288_s22, %s1288_s22 }
  0x6f   :  { %p1295_p12 = por %p1294_p11, %p1293_p10 }
  0x71   :  { %p1296_p13 = pnand %p1295_p12, %p1289_p9 }
  0x73   :  { %1299 = shalt.err (!%p1296_p13)
}
  0x74   :  { %114 = dma.hbm_to_vmem [thread:$0]  %s1612_s11, 2048, %s109_s24, [#allocation12], %s1333_s18, %s1333_s18, %s1334_s19  }
  0x75   :  { %1322 = dma.done.wait [#allocation3], 128  }
  0x76   :  { %1323 = vsyncadd [#allocation3], 4294967168 }
  0x77   :  { %1324 = dma.done.wait [#allocation6], 2560  }
  0x78   :  { %1325 = vsyncadd [#allocation6], 4294964736 }
  0x79   :  { %1326 = dma.done.wait [#allocation9], 4096  }
  0x7a   :  { %1327 = vsyncadd [#allocation9], 4294963200 }
  0x7b   :  { %1328 = dma.done.wait [#allocation12], 4096  }
  0x7c   :  { %1329 = vsyncadd [#allocation12], 4294963200  ;;  %v1341_v0 = vmov 0.0|0.0   ;;  %vm1342_vm0 = vmmov 0   ;;  %v1343_v1 = vmov 0.0   ;;  %v139_v2 = vld [vmem:[#allocation5] sm:$0xff] }
  0x7d   :  { %1003 = vmatprep.subr.bf16.mxu0 %v1341_v0  ;;  %825 = vmatprep.mubr.msk.f32.mxu0 %vm1342_vm0, %v1343_v1  ;;  %v140_v3 = vld [vmem:[#allocation5 + $0x8] sm:$0xff]  ;;  %v141_v4 = vld [vmem:[#allocation5 + $0x10] sm:$0xff]  ;;  %v142_v6 = vld [vmem:[#allocation5 + $0x18] sm:$0xff]  ;;  %vm150_vm1 = vcmask 261120   ;;  %s1344_s29 = smov [#allocation14]  }
  0x7e   :  { %1009 = vmatprep.subr.bf16.mxu1 %v1341_v0  ;;  %860 = vmatprep.mubr.msk.f32.mxu1 %vm1342_vm0, %v1343_v1  ;;  %v1004_v5 = vpack.c.bf16 %v140_v3, %v139_v2  ;;  %v225_v7 = vld [vmem:[#allocation7] sm:$0xff]  ;;  %v226_v8 = vld [vmem:[#allocation7 + $0x8] sm:$0xff]  ;;  %v227_v9 = vld [vmem:[#allocation7 + $0x10] sm:$0xff]  ;;  %v1007_v11 = vpack.c.bf16 %v142_v6, %v141_v4  ;;  %s707_s30 = sshll.u32 %s1344_s29, 4  ;;  %s708_s30 = int_to_ptr.vmem [resolvable:$true] %s707_s30 }
  0x7f   :  { %v228_v10 = vld [vmem:[#allocation7 + $0x18] sm:$0xff]  ;;  %v1010_v12 = vpack.c.bf16 %v226_v8, %v225_v7  ;;  %v229_v14 = vld [vmem:[#allocation7 + $0x20] sm:$0xff]  ;;  %v230_v15 = vld [vmem:[#allocation7 + $0x28] sm:$0xff]  ;;  %p1305_p1 = scmp.lt.s32.totalorder %s708_s30, %s708_s30 }
  0x80   :  { %1005 = vmatpush3.bf16.msra.mxu0 %v1004_v5  ;;  %v1013_v13 = vpack.c.bf16 %v228_v10, %v227_v9  ;;  %v138_v16 = vld [vmem:[#allocation2] sm:$0xff]  ;;  %v1016_v17 = vpack.c.bf16 %v230_v15, %v229_v14  ;;  %v231_v18 = vld [vmem:[#allocation7 + $0x30] sm:$0xff]  ;;  %v233_v21 = vld [vmem:[#allocation7 + $0x40] sm:$0xff] }
  0x81   :  { %1006 = vmatprep.subr.bf16.mxu0 %v1341_v0  ;;  %1011 = vmatpush3.bf16.msra.mxu1 %v1010_v12  ;;  %v232_v19 = vld [vmem:[#allocation7 + $0x38] sm:$0xff]  ;;  %v234_v22 = vld [vmem:[#allocation7 + $0x48] sm:$0xff]  ;;  %v235_v24 = vld [vmem:[#allocation7 + $0x50] sm:$0xff] }
  0x82   :  { %1012 = vmatprep.subr.bf16.mxu1 %v1341_v0  ;;  %v1019_v20 = vpack.c.bf16 %v232_v19, %v231_v18  ;;  %v1022_v23 = vpack.c.bf16 %v234_v22, %v233_v21  ;;  %v236_v25 = vld [vmem:[#allocation7 + $0x58] sm:$0xff]  ;;  %v237_v27 = vld [vmem:[#allocation7 + $0x60] sm:$0xff]  ;;  %v238_v28 = vld [vmem:[#allocation7 + $0x68] sm:$0xff] }
  0x83   :  { %v1025_v26 = vpack.c.bf16 %v236_v25, %v235_v24  ;;  %v1028_v29 = vpack.c.bf16 %v238_v28, %v237_v27  ;;  %v239_v30 = vld [vmem:[#allocation7 + $0x70] sm:$0xff]  ;;  %v240_v31 = vld [vmem:[#allocation7 + $0x78] sm:$0xff]  ;;  %v319_v33 = vld [vmem:[#allocation8] sm:$0xff] }
  0x84   :  { %1008 = vmatpush3.bf16.msra.mxu0 %v1007_v11  ;;  %v1031_v32 = vpack.c.bf16 %v240_v31, %v239_v30  ;;  %v320_v34 = vld [vmem:[#allocation8 + $0x8] sm:$0xff]  ;;  %v321_v35 = vld [vmem:[#allocation8 + $0x10] sm:$0xff]  ;;  %v322_v37 = vld [vmem:[#allocation8 + $0x18] sm:$0xff] }
  0x85   :  { %1033 = vmatprep.subr.bf16.mxu0 %v1341_v0  ;;  %1014 = vmatpush3.bf16.msra.mxu1 %v1013_v13  ;;  %v1034_v36 = vpack.c.bf16 %v320_v34, %v319_v33  ;;  %v1037_v38 = vpack.c.bf16 %v322_v37, %v321_v35  ;;  %v323_v39 = vld [vmem:[#allocation8 + $0x20] sm:$0xff]  ;;  %v324_v40 = vld [vmem:[#allocation8 + $0x28] sm:$0xff]  ;;  %v325_v42 = vld [vmem:[#allocation8 + $0x30] sm:$0xff] }
  0x86   :  { %1015 = vmatprep.subr.bf16.mxu1 %v1341_v0  ;;  %v1040_v41 = vpack.c.bf16 %v324_v40, %v323_v39  ;;  %v326_v43 = vld [vmem:[#allocation8 + $0x38] sm:$0xff]  ;;  %v327_v45 = vld [vmem:[#allocation8 + $0x40] sm:$0xff]  ;;  %v328_v46 = vld [vmem:[#allocation8 + $0x48] sm:$0xff] }
  0x87   :  { %826 = vmatmul.mubr.msk.f32.vlgmr.msra.gmra.mrb[0].mxu0 %vm150_vm1, %v138_v16  ;;  %v1043_v44 = vpack.c.bf16 %v326_v43, %v325_v42  ;;  %v1046_v47 = vpack.c.bf16 %v328_v46, %v327_v45  ;;  %v329_v48 = vld [vmem:[#allocation8 + $0x50] sm:$0xff]  ;;  %v330_v49 = vld [vmem:[#allocation8 + $0x58] sm:$0xff]  ;;  %v331_v51 = vld [vmem:[#allocation8 + $0x60] sm:$0xff] }
  0x88   :  { %895 = vmatprep.mubr.msk.f32.mxu0 %vm1342_vm0, %v1343_v1  ;;  %1035 = vmatpush3.bf16.msra.mxu0 %v1034_v36  ;;  %v1049_v50 = vpack.c.bf16 %v330_v49, %v329_v48  ;;  %v332_v52 = vld [vmem:[#allocation8 + $0x68] sm:$0xff]  ;;  %v719_v54 = vld [vmem:[%s1603_s2] ss:$0 sm:$0xff]  ;;  %v333_v59 = vld [vmem:[#allocation8 + $0x70] sm:$0xff] }
  0x89   :  { %1017 = vmatpush3.bf16.msra.mxu1 %v1016_v17  ;;  %1036 = vmatprep.subr.bf16.mxu0 %v1341_v0  ;;  %v1052_v53 = vpack.c.bf16 %v332_v52, %v331_v51  ;;  %v334_v60 = vld [vmem:[#allocation8 + $0x78] sm:$0xff]  ;;  %v413_v62 = vld [vmem:[#allocation10] sm:$0xff]  ;;  %v414_v63 = vld [vmem:[#allocation10 + $0x8] sm:$0xff] }
  0x8a   :  { %1018 = vmatprep.subr.bf16.mxu1 %v1341_v0  ;;  %v1055_v61 = vpack.c.bf16 %v334_v60, %v333_v59  ;;  %v415_v2 = vld [vmem:[#allocation10 + $0x10] sm:$0xff]  ;;  %v1058_v3 = vpack.c.bf16 %v414_v63, %v413_v62  ;;  %v416_v4 = vld [vmem:[#allocation10 + $0x18] sm:$0xff]  ;;  %v417_v6 = vld [vmem:[#allocation10 + $0x20] sm:$0xff] }
  0x8b   :  { %v1061_v5 = vpack.c.bf16 %v416_v4, %v415_v2  ;;  %v418_v7 = vld [vmem:[#allocation10 + $0x28] sm:$0xff]  ;;  %v419_v9 = vld [vmem:[#allocation10 + $0x30] sm:$0xff]  ;;  %v420_v10 = vld [vmem:[#allocation10 + $0x38] sm:$0xff] }
  0x8c   :  { %1038 = vmatpush3.bf16.msra.mxu0 %v1037_v38  ;;  %v1064_v8 = vpack.c.bf16 %v418_v7, %v417_v6  ;;  %v1067_v11 = vpack.c.bf16 %v420_v10, %v419_v9  ;;  %v421_v12 = vld [vmem:[#allocation10 + $0x40] sm:$0xff]  ;;  %v422_v13 = vld [vmem:[#allocation10 + $0x48] sm:$0xff]  ;;  %v423_v15 = vld [vmem:[#allocation10 + $0x50] sm:$0xff] }
  0x8d   :  { %1020 = vmatpush3.bf16.msra.mxu1 %v1019_v20  ;;  %1039 = vmatprep.subr.bf16.mxu0 %v1341_v0  ;;  %v1070_v14 = vpack.c.bf16 %v422_v13, %v421_v12  ;;  %v424_v16 = vld [vmem:[#allocation10 + $0x58] sm:$0xff]  ;;  %v425_v18 = vld [vmem:[#allocation10 + $0x60] sm:$0xff]  ;;  %v426_v19 = vld [vmem:[#allocation10 + $0x68] sm:$0xff] }
  0x8e   :  { %1021 = vmatprep.subr.bf16.mxu1 %v1341_v0  ;;  %v1073_v17 = vpack.c.bf16 %v424_v16, %v423_v15  ;;  %v1076_v20 = vpack.c.bf16 %v426_v19, %v425_v18  ;;  %v721_v21 = vld [vmem:[%s1605_s4] ss:$0 sm:$0xff]  ;;  %v508_v30 = vld [vmem:[#allocation11 + $0x8] sm:$0xff]  ;;  %v509_v31 = vld [vmem:[#allocation11 + $0x10] sm:$0xff] }
  0x8f   :  { %v428_v27 = vld [vmem:[#allocation10 + $0x78] sm:$0xff]  ;;  %v511_v35 = vld [vmem:[#allocation11 + $0x20] sm:$0xff]  ;;  %v512_v36 = vld [vmem:[#allocation11 + $0x28] sm:$0xff] }
  0x90   :  { %1041 = vmatpush3.bf16.msra.mxu0 %v1040_v41  ;;  %v510_v33 = vld [vmem:[#allocation11 + $0x18] sm:$0xff]  ;;  %v1088_v37 = vpack.c.bf16 %v512_v36, %v511_v35  ;;  %v513_v38 = vld [vmem:[#allocation11 + $0x30] sm:$0xff]  ;;  %v515_v41 = vld [vmem:[#allocation11 + $0x40] sm:$0xff] }
  0x91   :  { %1023 = vmatpush3.bf16.msra.mxu1 %v1022_v23  ;;  %1042 = vmatprep.subr.bf16.mxu0 %v1341_v0  ;;  %v1085_v34 = vpack.c.bf16 %v510_v33, %v509_v31  ;;  %v514_v39 = vld [vmem:[#allocation11 + $0x38] sm:$0xff]  ;;  %v516_v42 = vld [vmem:[#allocation11 + $0x48] sm:$0xff]  ;;  %v603_v60 = vld [vmem:[#allocation13 + $0x10] sm:$0xff] }
  0x92   :  { %1024 = vmatprep.subr.bf16.mxu1 %v1341_v0  ;;  %v1091_v40 = vpack.c.bf16 %v514_v39, %v513_v38  ;;  %v1094_v43 = vpack.c.bf16 %v516_v42, %v515_v41  ;;  %v518_v45 = vld [vmem:[#allocation11 + $0x58] sm:$0xff]  ;;  %v520_v48 = vld [vmem:[#allocation11 + $0x68] sm:$0xff]  ;;  %v605_v2 = vld [vmem:[#allocation13 + $0x20] sm:$0xff] }
  0x93   :  { %v602_v59 = vld [vmem:[#allocation13 + $0x8] sm:$0xff]  ;;  %v604_v62 = vld [vmem:[#allocation13 + $0x18] sm:$0xff]  ;;  %v609_v7 = vld [vmem:[#allocation13 + $0x40] sm:$0xff] }
  0x94   :  { %1044 = vmatpush3.bf16.msra.mxu0 %v1043_v44  ;;  %v517_v44 = vld [vmem:[#allocation11 + $0x50] sm:$0xff]  ;;  %v1109_v63 = vpack.c.bf16 %v604_v62, %v603_v60  ;;  %v613_v13 = vld [vmem:[#allocation13 + $0x60] sm:$0xff]  ;;  %v723_v16 = vld [vmem:[%s1609_s8] ss:$0 sm:$0xff] }
  0x95   :  { %1026 = vmatpush3.bf16.msra.mxu1 %v1025_v26  ;;  %1045 = vmatprep.subr.bf16.mxu0 %v1341_v0  ;;  %v427_v26 = vld [vmem:[#allocation10 + $0x70] sm:$0xff]  ;;  %v1097_v46 = vpack.c.bf16 %v518_v45, %v517_v44 }
  0x96   :  { %1027 = vmatprep.subr.bf16.mxu1 %v1341_v0  ;;  %v1079_v28 = vpack.c.bf16 %v428_v27, %v427_v26  ;;  %v611_v10 = vld [vmem:[#allocation13 + $0x50] sm:$0xff] }
  0x98   :  { %1047 = vmatpush3.bf16.msra.mxu0 %v1046_v47  ;;  %v519_v47 = vld [vmem:[#allocation11 + $0x60] sm:$0xff] }
  0x99   :  { %1029 = vmatpush3.bf16.msra.mxu1 %v1028_v29  ;;  %1048 = vmatprep.subr.bf16.mxu0 %v1341_v0  ;;  %v507_v29 = vld [vmem:[#allocation11] sm:$0xff]  ;;  %v1100_v49 = vpack.c.bf16 %v520_v48, %v519_v47 }
  0x9a   :  { %1030 = vmatprep.subr.bf16.mxu1 %v1341_v0 }
  0x9c   :  { %1050 = vmatpush3.bf16.msra.mxu0 %v1049_v50  ;;  %v722_v50 = vld [vmem:[%s1607_s6] ss:$0 sm:$0xff] }
  0x9d   :  { %1032 = vmatpush3.bf16.msra.mxu1 %v1031_v32  ;;  %1051 = vmatprep.subr.bf16.mxu0 %v1341_v0  ;;  %v1082_v32 = vpack.c.bf16 %v508_v30, %v507_v29 }
  0x9e   :  { %1057 = vmatprep.subr.bf16.mxu1 %v1341_v0 }
  0xa0   :  { %1053 = vmatpush3.bf16.msra.mxu0 %v1052_v53 }
  0xa1   :  { %1054 = vmatprep.subr.bf16.mxu0 %v1341_v0 }
  0xa4   :  { %1056 = vmatpush3.bf16.msra.mxu0 %v1055_v61 }
  0xa5   :  { %1081 = vmatprep.subr.bf16.mxu0 %v1341_v0 }
 0x15a   :  { %v220_v55 = vpop.f32.mrb[0].mxu0 }
 0x15b   :  { %v221_v56 = vadd.f32 %v719_v54, %v220_v55  ;;  %v827_v57 = vpop.f32.mrb[1].mxu0  ;;  %v521_v55 = vld [vmem:[#allocation11 + $0x70] sm:$0xff] }
 0x15d   :  { %v224_v58 = vmax.f32 %v221_v56, 0.0  ;;  %v522_v56 = vld [vmem:[#allocation11 + $0x78] sm:$0xff] }
 0x15e   :  { %v1103_v57 = vpack.c.bf16 %v522_v56, %v521_v55 }
 0x15f   :  { %861 = vmatmul.mubr.f32.vlgmr.msra.gmra.mrb[0].mxu1 %v224_v58  ;;  %v601_v58 = vld [vmem:[#allocation13] sm:$0xff] }
 0x160   :  { %930 = vmatprep.mubr.msk.f32.mxu1 %vm1342_vm0, %v1343_v1  ;;  %1059 = vmatpush3.bf16.msra.mxu1 %v1058_v3  ;;  %v1106_v61 = vpack.c.bf16 %v602_v59, %v601_v58  ;;  %v606_v3 = vld [vmem:[#allocation13 + $0x28] sm:$0xff] }
 0x161   :  { %1060 = vmatprep.subr.bf16.mxu1 %v1341_v0  ;;  %v1112_v4 = vpack.c.bf16 %v606_v3, %v605_v2 }
 0x164   :  { %1062 = vmatpush3.bf16.msra.mxu1 %v1061_v5  ;;  %v608_v5 = vld [vmem:[#allocation13 + $0x38] sm:$0xff] }
 0x165   :  { %1063 = vmatprep.subr.bf16.mxu1 %v1341_v0 }
 0x168   :  { %1065 = vmatpush3.bf16.msra.mxu1 %v1064_v8  ;;  %v610_v8 = vld [vmem:[#allocation13 + $0x48] sm:$0xff] }
 0x169   :  { %1066 = vmatprep.subr.bf16.mxu1 %v1341_v0  ;;  %v1118_v9 = vpack.c.bf16 %v610_v8, %v609_v7 }
 0x16c   :  { %1068 = vmatpush3.bf16.msra.mxu1 %v1067_v11  ;;  %v612_v11 = vld [vmem:[#allocation13 + $0x58] sm:$0xff] }
 0x16d   :  { %1069 = vmatprep.subr.bf16.mxu1 %v1341_v0  ;;  %v1121_v12 = vpack.c.bf16 %v612_v11, %v611_v10 }
 0x170   :  { %1071 = vmatpush3.bf16.msra.mxu1 %v1070_v14  ;;  %v614_v14 = vld [vmem:[#allocation13 + $0x68] sm:$0xff] }
 0x171   :  { %1072 = vmatprep.subr.bf16.mxu1 %v1341_v0  ;;  %v1124_v15 = vpack.c.bf16 %v614_v14, %v613_v13 }
 0x174   :  { %1074 = vmatpush3.bf16.msra.mxu1 %v1073_v17 }
 0x175   :  { %1075 = vmatprep.subr.bf16.mxu1 %v1341_v0 }
 0x178   :  { %1077 = vmatpush3.bf16.msra.mxu1 %v1076_v20 }
 0x179   :  { %1078 = vmatprep.subr.bf16.mxu1 %v1341_v0 }
 0x17c   :  { %1080 = vmatpush3.bf16.msra.mxu1 %v1079_v28  ;;  %v725_v28 = vld [vmem:[%s1613_s12] ss:$0 sm:$0xff] }
 0x17d   :  { %1105 = vmatprep.subr.bf16.mxu1 %v1341_v0 }
 0x232   :  { %v314_v22 = vpop.f32.mrb[0].mxu1 }
 0x233   :  { %v315_v23 = vadd.f32 %v721_v21, %v314_v22  ;;  %v862_v24 = vpop.f32.mrb[1].mxu1  ;;  %v615_v21 = vld [vmem:[#allocation13 + $0x70] sm:$0xff]  ;;  %v616_v22 = vld [vmem:[#allocation13 + $0x78] sm:$0xff] }
 0x234   :  { %v724_v24 = vld [vmem:[%s1611_s10] ss:$0 sm:$0xff]  ;;  %s1300_s10 = scalar_lea.vmem %s708_s30, 128 }
 0x235   :  { %v318_v25 = vmax.f32 %v315_v23, 0.0  ;;  %v1127_v23 = vpack.c.bf16 %v616_v22, %v615_v21  ;;  %p1301_p0 = scmp.ne.s32.totalorder %s708_s30, %s1300_s10  ;;  %p1306_p2 = scmp.lt.s32.totalorder %s1300_s10, %s1300_s10 }
 0x237   :  { %896 = vmatmul.mubr.f32.vlgmr.msra.gmra.mrb[2].mxu0 %v318_v25  ;;  %p1307_p3 = por %p1306_p2, %p1305_p1 }
 0x238   :  { %965 = vmatprep.mubr.msk.f32.mxu0 %vm1342_vm0, %v1343_v1  ;;  %1083 = vmatpush3.bf16.msra.mxu0 %v1082_v32 }
 0x239   :  { %1084 = vmatprep.subr.bf16.mxu0 %v1341_v0  ;;  %p1308_p4 = pnand %p1307_p3, %p1301_p0 }
 0x23c   :  { %1086 = vmatpush3.bf16.msra.mxu0 %v1085_v34 }
 0x23d   :  { %1087 = vmatprep.subr.bf16.mxu0 %v1341_v0 }
 0x240   :  { %1089 = vmatpush3.bf16.msra.mxu0 %v1088_v37 }
 0x241   :  { %1090 = vmatprep.subr.bf16.mxu0 %v1341_v0 }
 0x244   :  { %1092 = vmatpush3.bf16.msra.mxu0 %v1091_v40 }
 0x245   :  { %1093 = vmatprep.subr.bf16.mxu0 %v1341_v0 }
 0x248   :  { %1095 = vmatpush3.bf16.msra.mxu0 %v1094_v43 }
 0x249   :  { %1096 = vmatprep.subr.bf16.mxu0 %v1341_v0 }
 0x24c   :  { %1098 = vmatpush3.bf16.msra.mxu0 %v1097_v46 }
 0x24d   :  { %1099 = vmatprep.subr.bf16.mxu0 %v1341_v0 }
 0x250   :  { %1101 = vmatpush3.bf16.msra.mxu0 %v1100_v49 }
 0x251   :  { %1102 = vmatprep.subr.bf16.mxu0 %v1341_v0 }
 0x254   :  { %1104 = vmatpush3.bf16.msra.mxu0 %v1103_v57 }
 0x30a   :  { %v408_v51 = vpop.f32.mrb[2].mxu0 }
 0x30b   :  { %v409_v52 = vadd.f32 %v722_v50, %v408_v51  ;;  %v897_v53 = vpop.f32.mrb[3].mxu0 }
 0x30d   :  { %v412_v54 = vmax.f32 %v409_v52, 0.0 }
 0x30f   :  { %931 = vmatmul.mubr.f32.vlgmr.msra.gmra.mrb[2].mxu1 %v412_v54 }
 0x310   :  { %1000 = vmatprep.mubr.msk.f32.mxu1 %vm1342_vm0, %v1343_v1  ;;  %1107 = vmatpush3.bf16.msra.mxu1 %v1106_v61  ;;  %v607_v1 = vld [vmem:[#allocation13 + $0x30] sm:$0xff] }
 0x311   :  { %1108 = vmatprep.subr.bf16.mxu1 %v1341_v0  ;;  %v1115_v6 = vpack.c.bf16 %v608_v5, %v607_v1 }
 0x314   :  { %1110 = vmatpush3.bf16.msra.mxu1 %v1109_v63 }
 0x315   :  { %1111 = vmatprep.subr.bf16.mxu1 %v1341_v0 }
 0x318   :  { %1113 = vmatpush3.bf16.msra.mxu1 %v1112_v4 }
 0x319   :  { %1114 = vmatprep.subr.bf16.mxu1 %v1341_v0 }
 0x31c   :  { %1116 = vmatpush3.bf16.msra.mxu1 %v1115_v6 }
 0x31d   :  { %1117 = vmatprep.subr.bf16.mxu1 %v1341_v0 }
 0x320   :  { %1119 = vmatpush3.bf16.msra.mxu1 %v1118_v9 }
 0x321   :  { %1120 = vmatprep.subr.bf16.mxu1 %v1341_v0 }
 0x324   :  { %1122 = vmatpush3.bf16.msra.mxu1 %v1121_v12 }
 0x325   :  { %1123 = vmatprep.subr.bf16.mxu1 %v1341_v0 }
 0x328   :  { %1125 = vmatpush3.bf16.msra.mxu1 %v1124_v15 }
 0x329   :  { %1126 = vmatprep.subr.bf16.mxu1 %v1341_v0 }
 0x32c   :  { %1128 = vmatpush3.bf16.msra.mxu1 %v1127_v23 }
 0x3e2   :  { %v502_v17 = vpop.f32.mrb[2].mxu1 }
 0x3e3   :  { %v503_v18 = vadd.f32 %v723_v16, %v502_v17  ;;  %v932_v19 = vpop.f32.mrb[3].mxu1 }
 0x3e5   :  { %v506_v20 = vmax.f32 %v503_v18, 0.0 }
 0x3e7   :  { %966 = vmatmul.mubr.f32.vlgmr.msra.gmra.mrb[4].mxu0 %v506_v20 }
 0x4ba   :  { %v596_v25 = vpop.f32.mrb[4].mxu0 }
 0x4bb   :  { %v597_v26 = vadd.f32 %v724_v24, %v596_v25  ;;  %v967_v0 = vpop.f32.mrb[5].mxu0 }
 0x4bd   :  { %v600_v27 = vmax.f32 %v597_v26, 0.0 }
 0x4bf   :  { %1001 = vmatmul.mubr.f32.vlgmr.msra.gmra.mrb[4].mxu1 %v600_v27 }
 0x592   :  { %v690_v29 = vpop.f32.mrb[4].mxu1 }
 0x593   :  { %v691_v30 = vadd.f32 %v725_v28, %v690_v29  ;;  %v1002_v31 = vpop.f32.mrb[5].mxu1 }
 0x595   :  { %v726_v32 = vmul.f32 -1.442695, %v691_v30 }
 0x597   :  { %1142 = vpow2.f32 %v726_v32 }
 0x5a1   :  { %v1143_v33 = vpop.eup %1142 }
 0x5a2   :  { %v697_v34 = vadd.f32 1.0, %v1143_v33 }
 0x5a4   :  { %1144 = vrcp.f32 %v697_v34 }
 0x5ae   :  { %v1145_v35 = vpop.eup %1144 }
 0x5af   :  { %700 = vst [vmem:[#allocation14] sm:$0xff] %v1145_v35 }
 0x5b0   :  { %1311 = shalt.err (!%p1308_p4)
}
 0x5b1   :  { %s1312_s3 = scalar_lea.hbm %s1614_s13, 128 }
 0x5b2   :  { %p1313_p5 = scmp.ne.s32.totalorder %s1614_s13, %s1312_s3  ;;  %p1316_p6 = scmp.lt.u32.totalorder %s1312_s3, %s1614_s13 }
 0x5b4   :  { %p1318_p7 = pnand %p1316_p6, %p1313_p5 }
 0x5b6   :  { %1321 = shalt.err (!%p1318_p7)
}
 0x5b7   :  { %710 = dma.vmem_to_hbm [thread:$0]  %s708_s30, 128, %s1614_s13, [#allocation4]  }
 0x5b8   :  { %1330 = dma.done.wait [#allocation4], 128  }
 0x5b9   :  { %1331 = vsyncadd [#allocation4], 4294967168 }
 0x5ba   :  { %714 = vsyncpa [#allocation3], 1 }
 0x5bb   :  { %715 = vsyncpa [#allocation6], 1 }
 0x5bc   :  { %716 = vsyncpa [#allocation9], 1 }
 0x5bd   :  { %717 = vsyncpa [#allocation12], 1 }
 0x5be   :  { %718 = vsyncpa [#allocation4], 1 }

</bundles_post_ra>
